<compile_context>
chip_gen: v5e
topology: v5e:2x2
jax: 0.10.0
libtpu: 0.0.40
codegen_flags: <defaults>
</compile_context>

<pallas_src>
import functools

import jax
import jax.numpy as jnp
from jax.experimental import pallas as pl
from jax.experimental.pallas import tpu as pltpu


def _round_up(x, m):
    return (x + m - 1) // m * m


def _stochastic_posterior_kernel(pm_ref, ps_ref, emb_ref,
                                 w1_ref, b1_ref, w2_ref, b2_ref, w3_ref, b3_ref,
                                 out_ref, *, stoch: int, min_stddev: float):
    """One batch tile of the full MLP: 5 matmuls + ReLU + lane-masked softplus."""
    f32 = jnp.float32
    s = stoch

    # Layer 1: split-input Linear + ReLU (replaces concat([pm, ps, emb]) @ W1).
    # Static slices of w1_ref start at multiples of 8 rows -> free sublane-aligned views.
    h1 = (jnp.dot(pm_ref[...], w1_ref[0:s, :], preferred_element_type=f32)
          + jnp.dot(ps_ref[...], w1_ref[s:2 * s, :], preferred_element_type=f32)
          + jnp.dot(emb_ref[...], w1_ref[2 * s:, :], preferred_element_type=f32)
          + b1_ref[...])
    h1 = jnp.maximum(h1, 0.0)

    # Layer 2: Linear + ReLU.
    h2 = jnp.dot(h1, w2_ref[...], preferred_element_type=f32) + b2_ref[...]
    h2 = jnp.maximum(h2, 0.0)

    # Layer 3: Linear into the 128-lane-padded output slab [mean | stddev_pre | 0-pad].
    out = jnp.dot(h2, w3_ref[...], preferred_element_type=f32) + b3_ref[...]

    # torch.nn.functional.softplus with its default threshold=20 linearization.
    sp = jnp.where(out > 20.0, out, jnp.log1p(jnp.exp(jnp.minimum(out, 20.0))))

    # Lane mask on the TRUE stddev columns S..2S-1 (not slab_width//2): pad lanes and
    # mean lanes pass through untouched.
    col = jax.lax.broadcasted_iota(jnp.int32, out.shape, dimension=1)
    is_std = jnp.logical_and(col >= s, col < 2 * s)
    out_ref[...] = jnp.where(is_std, sp + jnp.float32(min_stddev), out).astype(out_ref.dtype)


def stochastic_posterior_forward(prior_mean, prior_stddev, embedded, params,
                                 min_stddev, *, batch_tile=512, min_batch_tiles=1):
    """prior_mean/prior_stddev: (B, S), embedded: (B, E). Returns (mean, stddev), each (B, S).

    batch_tile: max rows per grid step (sweep 256-1024; mem/overhead-bound kernel).
    min_batch_tiles: set to 2 on v7x for large B so the "parallel" batch axis shards
                     across both TensorCores.
    """
    w1, b1, w2, b2, w3, b3 = params      # weights (in, out), biases (1, out)
    B, S = prior_mean.shape
    E = embedded.shape[1]
    H = w2.shape[0]
    out_dim = w3.shape[1]                # 2 * S

    # Lane-dense output: zero-pad W3/b3 columns to a multiple of 128 lanes (weight-side,
    # tiny) so the final store is an unmasked full-lane vst.
    out_pad = max(_round_up(out_dim, 128), 128)
    if out_pad != out_dim:
        w3 = jnp.pad(w3, ((0, 0), (0, out_pad - out_dim)))
        b3 = jnp.pad(b3, ((0, 0), (0, out_pad - out_dim)))

    # Batch tiling with NO wrapper-side activation padding: pick TB to minimize the
    # ragged tail; Pallas masks OOB reads/writes of the last block.
    n_tiles = max(pl.cdiv(B, batch_tile), min_batch_tiles)
    TB = min(_round_up(pl.cdiv(B, n_tiles), 8), _round_up(B, 8))
    grid = (pl.cdiv(B, TB),)

    kernel = functools.partial(_stochastic_posterior_kernel,
                               stoch=int(S), min_stddev=float(min_stddev))

    def row_spec(cols):                  # streamed per batch tile
        return pl.BlockSpec((TB, cols), lambda i: (i, 0))

    def fixed(shape):                    # grid-invariant -> stays VMEM-resident
        return pl.BlockSpec(shape, lambda i: (0, 0))

    cost = pl.CostEstimate(
        flops=int(2 * B * ((2 * S + E) * H + H * H + H * out_dim)),
        transcendentals=int(2 * B * out_dim),
        bytes_accessed=int(4 * (B * (2 * S + E + out_pad)
                                + (2 * S + E) * H + H + H * H + H
                                + H * out_pad + out_pad)),
    )

    packed = pl.pallas_call(
        kernel,
        grid=grid,
        out_shape=jax.ShapeDtypeStruct((B, out_pad), jnp.float32),
        in_specs=[
            row_spec(S),                 # prior_mean
            row_spec(S),                 # prior_stddev
            row_spec(E),                 # embedded
            fixed((2 * S + E, H)),       # w1 (single ref; sliced statically in-kernel)
            fixed((1, H)),               # b1
            fixed((H, H)),               # w2
            fixed((1, H)),               # b2
            fixed((H, out_pad)),         # w3 (lane-padded)
            fixed((1, out_pad)),         # b3 (lane-padded)
        ],
        out_specs=row_spec(out_pad),
        compiler_params=pltpu.CompilerParams(dimension_semantics=("parallel",)),
        cost_estimate=cost,
    )(prior_mean, prior_stddev, embedded, w1, b1, w2, b2, w3, b3)

    return packed[:, :S], packed[:, S:out_dim]


def init_params(key, input_size, hidden_size, out_size):
    """Deterministic synthetic parameters. Weights stored as (in, out); biases as (1, out)."""
    ks = jax.random.split(key, 6)
    scale1 = 1.0 / jnp.sqrt(input_size)
    scale2 = 1.0 / jnp.sqrt(hidden_size)
    w1 = jax.random.uniform(ks[0], (input_size, hidden_size), jnp.float32, -scale1, scale1)
    b1 = jax.random.uniform(ks[1], (1, hidden_size), jnp.float32, -scale1, scale1)
    w2 = jax.random.uniform(ks[2], (hidden_size, hidden_size), jnp.float32, -scale2, scale2)
    b2 = jax.random.uniform(ks[3], (1, hidden_size), jnp.float32, -scale2, scale2)
    w3 = jax.random.uniform(ks[4], (hidden_size, out_size), jnp.float32, -scale2, scale2)
    b3 = jax.random.uniform(ks[5], (1, out_size), jnp.float32, -scale2, scale2)
    return (w1, b1, w2, b2, w3, b3)


def reference_forward(prior_mean, prior_stddev, embedded, params, min_stddev):
    """Pure-JAX reference mirroring the PyTorch module (full-f32 matmuls)."""
    w1, b1, w2, b2, w3, b3 = params
    hi = jax.lax.Precision.HIGHEST
    x = jnp.concatenate([prior_mean, prior_stddev, embedded], axis=1)
    h = jax.nn.relu(jnp.dot(x, w1, precision=hi) + b1)
    h = jax.nn.relu(jnp.dot(h, w2, precision=hi) + b2)
    out = jnp.dot(h, w3, precision=hi) + b3
    mean, std_pre = jnp.split(out, 2, axis=-1)
    std = jax.nn.softplus(std_pre) + min_stddev
    return mean, std


if __name__ == "__main__":
    # Module config (small, consistent with the forward pass):
    stoch_state = 16
    embedded_size = 32
    hidden_size = 2 * stoch_state               # default hidden_size in __init__
    input_size = 2 * stoch_state + embedded_size
    out_size = 2 * stoch_state
    min_stddev = 0.1

    key = jax.random.PRNGKey(0)
    params = init_params(jax.random.fold_in(key, 0), input_size, hidden_size, out_size)

    # batch=8 -> TB=8, grid=(1,); batch=200 -> TB=200 (no padded/garbage rows), grid=(1,)
    for batch in (8, 200):
        kb = jax.random.fold_in(key, batch)
        k1, k2, k3 = jax.random.split(kb, 3)
        prior_mean = jax.random.normal(k1, (batch, stoch_state), jnp.float32)
        prior_stddev = jax.nn.softplus(
            jax.random.normal(k2, (batch, stoch_state), jnp.float32)) + min_stddev
        embedded = jax.random.normal(k3, (batch, embedded_size), jnp.float32)

        mean, std = stochastic_posterior_forward(prior_mean, prior_stddev, embedded,
                                                 params, min_stddev)
        jax.block_until_ready((mean, std))

        # Correctness check against the pure-JAX reference.
        ref_mean, ref_std = reference_forward(prior_mean, prior_stddev, embedded,
                                              params, min_stddev)
        assert mean.shape == (batch, stoch_state) and std.shape == (batch, stoch_state)
        assert jnp.allclose(mean, ref_mean, atol=1e-4, rtol=1e-4)
        assert jnp.allclose(std, ref_std, atol=1e-4, rtol=1e-4)
        assert bool(jnp.all(std >= min_stddev - 1e-6))

    print("KERNEL_OK")
</pallas_src>

<mosaic_0001>
module attributes {stable_mosaic.version = 11 : i64} {
  func.func @_stochastic_posterior_kernel(%arg0: i32, %arg1: memref<8x16xf32, #tpu.memory_space<vmem>>, %arg2: memref<8x16xf32, #tpu.memory_space<vmem>>, %arg3: memref<8x32xf32, #tpu.memory_space<vmem>>, %arg4: memref<64x32xf32, #tpu.memory_space<vmem>>, %arg5: memref<1x32xf32, #tpu.memory_space<vmem>>, %arg6: memref<32x32xf32, #tpu.memory_space<vmem>>, %arg7: memref<1x32xf32, #tpu.memory_space<vmem>>, %arg8: memref<32x128xf32, #tpu.memory_space<vmem>>, %arg9: memref<1x128xf32, #tpu.memory_space<vmem>>, %arg10: memref<8x128xf32, #tpu.memory_space<vmem>>) attributes {dimension_semantics = [#tpu.dimension_semantics<parallel>], iteration_bounds = array<i64: 1>, scalar_prefetch = 0 : i64, scratch_operands = 0 : i64, tpu.core_type = #tpu.core_type<tc>, window_params = [{transform_indices = @transform_0, window_bounds = array<i64: 8, 16>}, {transform_indices = @transform_1, window_bounds = array<i64: 8, 16>}, {transform_indices = @transform_2, window_bounds = array<i64: 8, 32>}, {pipeline_mode = #tpu.pipeline_mode<synchronous>, transform_indices = @transform_3, window_bounds = array<i64: 64, 32>}, {pipeline_mode = #tpu.pipeline_mode<synchronous>, transform_indices = @transform_4, window_bounds = array<i64: 1, 32>}, {pipeline_mode = #tpu.pipeline_mode<synchronous>, transform_indices = @transform_5, window_bounds = array<i64: 32, 32>}, {pipeline_mode = #tpu.pipeline_mode<synchronous>, transform_indices = @transform_6, window_bounds = array<i64: 1, 32>}, {pipeline_mode = #tpu.pipeline_mode<synchronous>, transform_indices = @transform_7, window_bounds = array<i64: 32, 128>}, {pipeline_mode = #tpu.pipeline_mode<synchronous>, transform_indices = @transform_8, window_bounds = array<i64: 1, 128>}, {transform_indices = @transform_9, window_bounds = array<i64: 8, 128>}]} {
    %c0 = arith.constant 0 : index
    %c0_0 = arith.constant 0 : index
    %0 = vector.load %arg1[%c0, %c0_0] : memref<8x16xf32, #tpu.memory_space<vmem>>, vector<8x16xf32>
    %c0_1 = arith.constant 0 : index
    %c0_2 = arith.constant 0 : index
    %1 = vector.load %arg4[%c0_1, %c0_2] : memref<64x32xf32, #tpu.memory_space<vmem>>, vector<16x32xf32>
    %cst = arith.constant dense<0.000000e+00> : vector<8x32xf32>
    %2 = tpu.matmul %0, %1, %cst {dimension_numbers = #tpu.dot_dimension_numbers<[1], [0], [0], [1], [0, 0, 1, 1], [], []>} : vector<8x16xf32>, vector<16x32xf32>, vector<8x32xf32> -> vector<8x32xf32>
    %c0_3 = arith.constant 0 : index
    %c0_4 = arith.constant 0 : index
    %3 = vector.load %arg2[%c0_3, %c0_4] : memref<8x16xf32, #tpu.memory_space<vmem>>, vector<8x16xf32>
    %c16 = arith.constant 16 : index
    %c0_5 = arith.constant 0 : index
    %4 = vector.load %arg4[%c16, %c0_5] : memref<64x32xf32, #tpu.memory_space<vmem>>, vector<16x32xf32>
    %cst_6 = arith.constant dense<0.000000e+00> : vector<8x32xf32>
    %5 = tpu.matmul %3, %4, %cst_6 {dimension_numbers = #tpu.dot_dimension_numbers<[1], [0], [0], [1], [0, 0, 1, 1], [], []>} : vector<8x16xf32>, vector<16x32xf32>, vector<8x32xf32> -> vector<8x32xf32>
    %6 = arith.addf %2, %5 : vector<8x32xf32>
    %c0_7 = arith.constant 0 : index
    %c0_8 = arith.constant 0 : index
    %7 = vector.load %arg3[%c0_7, %c0_8] : memref<8x32xf32, #tpu.memory_space<vmem>>, vector<8x32xf32>
    %c32 = arith.constant 32 : index
    %c0_9 = arith.constant 0 : index
    %8 = vector.load %arg4[%c32, %c0_9] : memref<64x32xf32, #tpu.memory_space<vmem>>, vector<32x32xf32>
    %cst_10 = arith.constant dense<0.000000e+00> : vector<8x32xf32>
    %9 = tpu.matmul %7, %8, %cst_10 {dimension_numbers = #tpu.dot_dimension_numbers<[1], [0], [0], [1], [0, 0, 1, 1], [], []>} : vector<8x32xf32>, vector<32x32xf32>, vector<8x32xf32> -> vector<8x32xf32>
    %10 = arith.addf %6, %9 : vector<8x32xf32>
    %c0_11 = arith.constant 0 : index
    %c0_12 = arith.constant 0 : index
    %11 = vector.load %arg5[%c0_11, %c0_12] : memref<1x32xf32, #tpu.memory_space<vmem>>, vector<1x32xf32>
    %12 = vector.broadcast %11 : vector<1x32xf32> to vector<8x32xf32>
    %13 = arith.addf %10, %12 : vector<8x32xf32>
    %cst_13 = arith.constant 0.000000e+00 : f32
    %14 = vector.broadcast %cst_13 : f32 to vector<8x32xf32>
    %15 = arith.maximumf %13, %14 : vector<8x32xf32>
    %c0_14 = arith.constant 0 : index
    %c0_15 = arith.constant 0 : index
    %16 = vector.load %arg6[%c0_14, %c0_15] : memref<32x32xf32, #tpu.memory_space<vmem>>, vector<32x32xf32>
    %cst_16 = arith.constant dense<0.000000e+00> : vector<8x32xf32>
    %17 = tpu.matmul %15, %16, %cst_16 {dimension_numbers = #tpu.dot_dimension_numbers<[1], [0], [0], [1], [0, 0, 1, 1], [], []>} : vector<8x32xf32>, vector<32x32xf32>, vector<8x32xf32> -> vector<8x32xf32>
    %c0_17 = arith.constant 0 : index
    %c0_18 = arith.constant 0 : index
    %18 = vector.load %arg7[%c0_17, %c0_18] : memref<1x32xf32, #tpu.memory_space<vmem>>, vector<1x32xf32>
    %19 = vector.broadcast %18 : vector<1x32xf32> to vector<8x32xf32>
    %20 = arith.addf %17, %19 : vector<8x32xf32>
    %cst_19 = arith.constant 0.000000e+00 : f32
    %21 = vector.broadcast %cst_19 : f32 to vector<8x32xf32>
    %22 = arith.maximumf %20, %21 : vector<8x32xf32>
    %c0_20 = arith.constant 0 : index
    %c0_21 = arith.constant 0 : index
    %23 = vector.load %arg8[%c0_20, %c0_21] : memref<32x128xf32, #tpu.memory_space<vmem>>, vector<32x128xf32>
    %cst_22 = arith.constant dense<0.000000e+00> : vector<8x128xf32>
    %24 = tpu.matmul %22, %23, %cst_22 {dimension_numbers = #tpu.dot_dimension_numbers<[1], [0], [0], [1], [0, 0, 1, 1], [], []>} : vector<8x32xf32>, vector<32x128xf32>, vector<8x128xf32> -> vector<8x128xf32>
    %c0_23 = arith.constant 0 : index
    %c0_24 = arith.constant 0 : index
    %25 = vector.load %arg9[%c0_23, %c0_24] : memref<1x128xf32, #tpu.memory_space<vmem>>, vector<1x128xf32>
    %26 = vector.broadcast %25 : vector<1x128xf32> to vector<8x128xf32>
    %27 = arith.addf %24, %26 : vector<8x128xf32>
    %cst_25 = arith.constant 2.000000e+01 : f32
    %28 = vector.broadcast %cst_25 : f32 to vector<8x128xf32>
    %29 = arith.cmpf ogt, %27, %28 : vector<8x128xf32>
    %cst_26 = arith.constant 2.000000e+01 : f32
    %30 = vector.broadcast %cst_26 : f32 to vector<8x128xf32>
    %31 = arith.minimumf %27, %30 : vector<8x128xf32>
    %32 = math.exp %31 : vector<8x128xf32>
    %33 = math.log1p %32 : vector<8x128xf32>
    %34 = arith.select %29, %27, %33 : vector<8x128xi1>, vector<8x128xf32>
    %35 = tpu.iota {dimensions = array<i32: 1>} : vector<8x128xi32>
    %c16_i32 = arith.constant 16 : i32
    %36 = vector.broadcast %c16_i32 : i32 to vector<8x128xi32>
    %37 = arith.cmpi sge, %35, %36 : vector<8x128xi32>
    %c32_i32 = arith.constant 32 : i32
    %38 = vector.broadcast %c32_i32 : i32 to vector<8x128xi32>
    %39 = arith.cmpi slt, %35, %38 : vector<8x128xi32>
    %40 = arith.andi %37, %39 : vector<8x128xi1>
    %cst_27 = arith.constant 1.000000e-01 : f32
    %41 = vector.broadcast %cst_27 : f32 to vector<8x128xf32>
    %42 = arith.addf %34, %41 : vector<8x128xf32>
    %43 = arith.select %40, %42, %27 : vector<8x128xi1>, vector<8x128xf32>
    %c0_28 = arith.constant 0 : index
    %c0_29 = arith.constant 0 : index
    %44 = vector.load %arg10[%c0_28, %c0_29] : memref<8x128xf32, #tpu.memory_space<vmem>>, vector<8x128xf32>
    tpu.vector_store %arg10[%c0_28, %c0_29], %43 {strides = array<i32>} : memref<8x128xf32, #tpu.memory_space<vmem>>, vector<8x128xf32>,
    return
  }
  func.func @transform_0(%arg0: i32) -> (i32, i32) {
    %c0_i32 = arith.constant 0 : i32
    %c0_i32_0 = arith.constant 0 : i32
    return %arg0, %c0_i32 : i32, i32
  }
  func.func @transform_1(%arg0: i32) -> (i32, i32) {
    %c0_i32 = arith.constant 0 : i32
    %c0_i32_0 = arith.constant 0 : i32
    return %arg0, %c0_i32 : i32, i32
  }
  func.func @transform_2(%arg0: i32) -> (i32, i32) {
    %c0_i32 = arith.constant 0 : i32
    %c0_i32_0 = arith.constant 0 : i32
    return %arg0, %c0_i32 : i32, i32
  }
  func.func @transform_3(%arg0: i32) -> (i32, i32) {
    %c0_i32 = arith.constant 0 : i32
    %c0_i32_0 = arith.constant 0 : i32
    %c0_i32_1 = arith.constant 0 : i32
    return %c0_i32, %c0_i32_0 : i32, i32
  }
  func.func @transform_4(%arg0: i32) -> (i32, i32) {
    %c0_i32 = arith.constant 0 : i32
    %c0_i32_0 = arith.constant 0 : i32
    %c0_i32_1 = arith.constant 0 : i32
    return %c0_i32, %c0_i32_0 : i32, i32
  }
  func.func @transform_5(%arg0: i32) -> (i32, i32) {
    %c0_i32 = arith.constant 0 : i32
    %c0_i32_0 = arith.constant 0 : i32
    %c0_i32_1 = arith.constant 0 : i32
    return %c0_i32, %c0_i32_0 : i32, i32
  }
  func.func @transform_6(%arg0: i32) -> (i32, i32) {
    %c0_i32 = arith.constant 0 : i32
    %c0_i32_0 = arith.constant 0 : i32
    %c0_i32_1 = arith.constant 0 : i32
    return %c0_i32, %c0_i32_0 : i32, i32
  }
  func.func @transform_7(%arg0: i32) -> (i32, i32) {
    %c0_i32 = arith.constant 0 : i32
    %c0_i32_0 = arith.constant 0 : i32
    %c0_i32_1 = arith.constant 0 : i32
    return %c0_i32, %c0_i32_0 : i32, i32
  }
  func.func @transform_8(%arg0: i32) -> (i32, i32) {
    %c0_i32 = arith.constant 0 : i32
    %c0_i32_0 = arith.constant 0 : i32
    %c0_i32_1 = arith.constant 0 : i32
    return %c0_i32, %c0_i32_0 : i32, i32
  }
  func.func @transform_9(%arg0: i32) -> (i32, i32) {
    %c0_i32 = arith.constant 0 : i32
    %c0_i32_0 = arith.constant 0 : i32
    return %arg0, %c0_i32 : i32, i32
  }
}

</mosaic_0001>

<bundles_post_ra>
// kernel: tpu_custom_call.1
= control target key start
LH: loop header
LB: loop body
LE: loop exit
PB: predicated region body
PF: predicated region fallthrough
CT: control target
= control target key end

     0   :  { %vm39_vm0 = vcmask 130048   ;;  %s385_s0 = inlined_call_operand.vmem [shape: f32[8,16], index: 0, kind: input, shape index: {}]   ;;  %s386_s1 = inlined_call_operand.vmem [shape: f32[8,16], index: 1, kind: input, shape index: {}]   ;;  %s387_s2 = inlined_call_operand.vmem [shape: f32[8,32], index: 2, kind: input, shape index: {}]   ;;  %s388_s3 = inlined_call_operand.vmem [shape: f32[64,32], index: 3, kind: input, shape index: {}]   ;;  %s389_s4 = inlined_call_operand.vmem [shape: f32[1,32], index: 4, kind: input, shape index: {}]   ;;  %s390_s5 = inlined_call_operand.vmem [shape: f32[32,32], index: 5, kind: input, shape index: {}]   ;;  %s391_s6 = inlined_call_operand.vmem [shape: f32[1,32], index: 6, kind: input, shape index: {}]   ;;  %s392_s7 = inlined_call_operand.vmem [shape: f32[32,128], index: 7, kind: input, shape index: {}]   ;;  %s393_s8 = inlined_call_operand.vmem [shape: f32[1,128], index: 8, kind: input, shape index: {}]   ;;  %s394_s9 = inlined_call_operand.hbm [shape: f32[8,128], index: 9, kind: output, shape index: {}]  }
   0x1   :  { %v90_v0 = vld [vmem:[%s388_s3 + $0x38] sm:$0xff]  ;;  %v89_v1 = vld [vmem:[%s388_s3 + $0x30] sm:$0xff]  ;;  %v88_v2 = vld [vmem:[%s388_s3 + $0x28] sm:$0xff] }
   0x2   :  { %107 = vmatpush.msra.mxu2 %v90_v0  ;;  %v38_v3 = vld [vmem:[%s388_s3 + $0x18] sm:$0xff]  ;;  %v87_v4 = vld [vmem:[%s388_s3 + $0x20] sm:$0xff]  ;;  %v35_v5 = vld [vmem:[%s388_s3 + $0x8] sm:$0xff] }
   0x3   :  { %57 = vmatpush.msra.mxu0 %v38_v3  ;;  %v37_v6 = vld [vmem:[%s388_s3 + $0x10] sm:$0xff]  ;;  %v34_v7 = vld [vmem:[%s388_s3] sm:$0xff]  ;;  %80 = vmatpush.msra.mxu1 %v35_v5 }
   0x4   :  { %108 = vmatpush.msra.mxu2 %v89_v1  ;;  %v36_v8 = vld [vmem:[%s386_s1] sm:$0xff] }
   0x5   :  { %v33_v9 = vld [vmem:[%s385_s0] sm:$0xff]  ;;  %58 = vmatpush.msra.mxu0 %v37_v6 }
   0x6   :  { %14 = vsyncpa [#allocation3], 0  ;;  %109 = vmatpush.msra.mxu2 %v88_v2  ;;  %v86_v10 = vld [vmem:[%s387_s2] sm:$0xff]  ;;  %vm91_vm1 = vcmask 261120   ;;  %81 = vmatpush.msra.mxu1 %v34_v7  ;;  %v125_v11 = vld [vmem:[%s390_s5 + $0x18] sm:$0xff]  ;;  %v199_v39 = vlaneseq  ;;  %s214_s27 = sshll.u32 %s394_s9, 4  ;;  %s215_s27 = int_to_ptr.hbm [resolvable:$true] %s214_s27 }
   0x7   :  { %223 = vmatmul.msk.f32.vlgmr.msra.gmra.mxu0 %vm39_vm0, %v36_v8  ;;  %224 = vmatmul.msk.f32.vlgmr.msra.gmra.mxu1 %vm39_vm0, %v33_v9  ;;  %v124_v12 = vld [vmem:[%s390_s5 + $0x10] sm:$0xff]  ;;  %v123_v13 = vld [vmem:[%s390_s5 + $0x8] sm:$0xff]  ;;  %v122_v14 = vld [vmem:[%s390_s5] sm:$0xff] }
   0x8   :  { %110 = vmatpush.msra.mxu2 %v87_v4  ;;  %145 = vmatpush.msra.mxu3 %v125_v11  ;;  %v157_v15 = vld [vmem:[%s392_s7 + $0x18] sm:$0xff]  ;;  %v156_v16 = vld [vmem:[%s392_s7 + $0x10] sm:$0xff]  ;;  %v229_v20 = vld [vmem:[%s389_s4] ss:$0 sm:$0xff]  ;;  %v200_v41 = vand.u32 127, %v199_v39 }
   0x9   :  { %225 = vmatmul.msk.f32.vlgmr.msra.gmra.mxu2 %vm91_vm1, %v86_v10  ;;  %177 = vmatpush.msrb.mxu0 %v157_v15  ;;  %v155_v25 = vld [vmem:[%s392_s7 + $0x8] sm:$0xff]  ;;  %v154_v26 = vld [vmem:[%s392_s7] sm:$0xff] }
   0xa   :  { %146 = vmatpush.msra.mxu3 %v124_v12  ;;  %v230_v27 = vld [vmem:[%s391_s6] ss:$0 sm:$0xff]  ;;  %vm201_vm2 = vcmp.ge.s32.totalorder %v200_v41, 16  ;;  %vm202_vm3 = vcmp.lt.s32.totalorder %v200_v41, 32  ;;  %s262_s6 = smov [#allocation2]  }
   0xb   :  { %178 = vmatpush.msrb.mxu0 %v156_v16  ;;  %v231_v31 = vld [vmem:[%s393_s8] ss:$0 sm:$0xff]  ;;  %s212_s7 = sshll.u32 %s262_s6, 4  ;;  %vm203_vm6 = vmand %vm201_vm2, %vm202_vm3  ;;  %s213_s7 = int_to_ptr.vmem [resolvable:$true] %s212_s7 }
   0xc   :  { %147 = vmatpush.msra.mxu3 %v123_v13 }
   0xd   :  { %179 = vmatpush.msrb.mxu0 %v155_v25 }
   0xe   :  { %148 = vmatpush.msra.mxu3 %v122_v14 }
   0xf   :  { %180 = vmatpush.msrb.mxu0 %v154_v26 }
  0x84   :  { %v60_v17 = vpop.f32.mrf.mxu0  ;;  %v83_v18 = vpop.f32.mrf.mxu1 }
  0x85   :  { %v84_v19 = vadd.f32 %v83_v18, %v60_v17 }
  0x8c   :  { %v112_v21 = vpop.f32.mrf.mxu2 }
  0x8d   :  { %v115_v22 = vadd.f32 %v112_v21, %v84_v19 }
  0x8f   :  { %v120_v23 = vadd.f32 %v229_v20, %v115_v22 }
  0x91   :  { %v121_v24 = vmax.f32 %v120_v23, 0.0 }
  0x93   :  { %226 = vmatmul.msk.f32.vlgmr.msra.gmra.mxu3 %vm91_vm1, %v121_v24 }
 0x116   :  { %v150_v28 = vpop.f32.mrf.mxu3 }
 0x117   :  { %v151_v29 = vadd.f32 %v230_v27, %v150_v28 }
 0x119   :  { %v153_v30 = vmax.f32 %v151_v29, 0.0 }
 0x11b   :  { %227 = vmatmul.msk.f32.vlgmr.msrb.gmra.mxu0 %vm91_vm1, %v153_v30 }
 0x198   :  { %v182_v32 = vpop.f32.mrf.mxu0 }
 0x199   :  { %v183_v33 = vadd.f32 %v231_v31, %v182_v32 }
 0x19b   :  { %v186_v34 = vmin.f32 %v183_v33, 20.0  ;;  %vm185_vm5 = vcmp.gt.f32.partialorder %v183_v33, 20.0 }
 0x19d   :  { %v187_v35 = vmul.f32 1.442695, %v186_v34 }
 0x19f   :  { %232 = vpow2.f32 %v187_v35 }
 0x1a5   :  { %v233_v36 = vpop.eup %232 }
 0x1a6   :  { %v189_v37 = vadd.f32 1.0, %v233_v36  ;;  %v192_v38 = vmul.f32 -0.5, %v233_v36  ;;  %v195_v42 = vand.u32 2147483647, %v233_v36 }
 0x1a8   :  { %234 = vlog2.f32 %v189_v37  ;;  %v193_v40 = vadd.f32 1.0, %v192_v38  ;;  %vm196_vm4 = vcmp.lt.f32.partialorder %v195_v42, 0.0004427343 }
 0x1aa   :  { %v194_v45 = vmul.f32 %v233_v36, %v193_v40 }
 0x1ae   :  { %v235_v43 = vpop.eup %234 }
 0x1af   :  { %v191_v44 = vmul.f32 0.6931472, %v235_v43 }
 0x1b1   :  { %v197_v46 = vsel %vm196_vm4, %v194_v45, %v191_v44 }
 0x1b2   :  { %v198_v47 = vsel %vm185_vm5, %v183_v33, %v197_v46 }
 0x1b3   :  { %v204_v48 = vadd.f32 0.1, %v198_v47 }
 0x1b5   :  { %v205_v49 = vsel %vm203_vm6, %v204_v48, %v183_v33 }
 0x1b6   :  { %206 = vst [vmem:[#allocation2] sm:$0xff] %v205_v49 }
 0x1b7   :  { %217 = dma.vmem_to_hbm [thread:$0]  %s213_s7, 128, %s215_s27, [#allocation3]  }
 0x1b8   :  { %260 = dma.done.wait [#allocation3], 128  }
 0x1b9   :  { %261 = vsyncadd [#allocation3], 4294967168 }
 0x1ba   :  { %222 = vsyncpa [#allocation3], 1 }

</bundles_post_ra>
